<compile_context>
chip_gen: v7x
topology: tpu7x:2x2x1
jax: 0.10.0
libtpu: 0.0.40
codegen_flags: <defaults>
</compile_context>

<pallas_src>
import math

import jax
import jax.numpy as jnp
from jax.experimental import pallas as pl
from jax.experimental.pallas import tpu as pltpu


def lid_kernel(x_ref,                 # (D_in, row_tile) bf16, lane-dense
               wf_ref, bf_ref,        # LID_Frame.fc        (H_FC, D_in), (H_FC, 1)
               wi_ref, bi_ref,        # LID_Utt.fc_input    (HL0,  H_FC), (HL0, 1)
               wof_ref, bof_ref,      # fused fc_list[0]+fc_output (C, HL0), (C, 1)
               out_ref):              # (C, row_tile) f32, lane-dense
    # h1^T = relu(Wf @ x^T + bf)   -- x already arrives transposed, plain MXU dot.
    h = jnp.dot(wf_ref[...], x_ref[...],
                preferred_element_type=jnp.float32)               # (H_FC, R) f32
    h = jnp.maximum(h + bf_ref[...], 0.0)

    # h2^T = relu(Wi @ h1^T + bi)
    h = jnp.dot(wi_ref[...], h.astype(jnp.bfloat16),
                preferred_element_type=jnp.float32) + bi_ref[...]  # (HL0, R)
    h = jnp.maximum(h, 0.0)

    # logits^T = (Wo @ W1) @ h2^T + (Wo @ b1 + bo)   -- fused last two linears.
    logits = jnp.dot(wof_ref[...], h.astype(jnp.bfloat16),
                     preferred_element_type=jnp.float32) + bof_ref[...]  # (C, R)

    # LogSoftmax over the class axis (sublane axis here), numerically stable.
    m = jnp.max(logits, axis=0, keepdims=True)
    z = logits - m
    lse = jnp.log(jnp.sum(jnp.exp(z), axis=0, keepdims=True))
    out_ref[...] = (z - lse).astype(out_ref.dtype)


def _round_up(x, m):
    return ((x + m - 1) // m) * m


def _tcs_per_chip():
    # Best-effort: only v7x has 2 TensorCores per chip; v5e/v6e have 1.
    try:
        kind = jax.devices()[0].device_kind.lower()
        if "v7" in kind:
            return 2
    except Exception:
        pass
    return 1


def _choose_row_tile(m_rows, requested):
    # Tiles must be a multiple of 128 (lane dim of the (C, row_tile) out block).
    rt = max(128, _round_up(requested, 128))
    # Never bigger than the (padded) problem.
    rt = min(rt, _round_up(max(m_rows, 1), 128))
    # Only on 2-TensorCore chips (v7x): keep an even number (>= 2) of grid
    # steps so the "parallel" grid axis feeds both cores; on v5e/v6e return
    # the requested tile unchanged (halving it only doubles step overhead).
    if _tcs_per_chip() >= 2 and m_rows >= 2 * 128:
        n = max(2, pl.cdiv(m_rows, rt))
        if n % 2:
            n += 1
        rt = max(128, min(rt, _round_up(pl.cdiv(m_rows, n), 128)))
    return rt


def lid_forward(x, params, *, row_tile=8192):
    """x: (T, B, D_in) float32.  Returns (T, B, C) float32 log-probs."""
    T, B, D_in = x.shape
    (wf, bf), (wi, bi), (w1, b1), (wo, bo) = params
    H_FC = wf.shape[0]
    HL0 = wi.shape[0]
    C = wo.shape[0]

    # Exact algebraic fusion of fc_list[0] and fc_output (no activation between):
    #   logits = Wo @ (W1 @ h2 + b1) + bo = (Wo @ W1) @ h2 + (Wo @ b1 + bo)
    # Computed once, in f32, in the wrapper.
    w_fused = wo @ w1                       # (C, HL0) f32
    b_fused = wo @ b1 + bo                  # (C,)     f32

    M = T * B
    row_tile = _choose_row_tile(M, row_tile)
    n_tiles = pl.cdiv(M, row_tile)
    M_pad = n_tiles * row_tile

    # Single fused relayout of x: cast -> transpose -> pad (pure elementwise /
    # layout ops that XLA fuses into one pass over x).  The kernel then reads
    # lane-dense (D_in, row_tile) bf16 blocks that feed the MXU directly.
    xt = x.reshape(M, D_in).T.astype(jnp.bfloat16)       # (D_in, M)
    if M_pad != M:
        xt = jnp.pad(xt, ((0, 0), (0, M_pad - M)))

    to_bf16 = lambda w: w.astype(jnp.bfloat16)
    to_col = lambda b: b.reshape(-1, 1).astype(jnp.float32)

    def const_spec(shape):
        return pl.BlockSpec(shape, lambda i: (0, 0))     # resident: DMA'd once

    # Advisory cost hint so XLA schedules the surrounding cast/transpose/slice
    # ops sensibly around the kernel.
    weight_bytes = 2 * (H_FC * D_in + HL0 * H_FC + C * HL0) + 4 * (H_FC + HL0 + C)
    cost = pl.CostEstimate(
        flops=2 * M_pad * (D_in * H_FC + H_FC * HL0 + HL0 * C),
        transcendentals=M_pad * (C + 1),                 # exp per class + log per row
        bytes_accessed=M_pad * (2 * D_in + 4 * C) + weight_bytes,
    )

    # VMEM budget check: only raise the scoped limit if we actually approach
    # v5e's 16 MiB default (v6e/v7x default is 32 MiB).
    vmem_est = (row_tile * (2 * (2 * D_in)        # x block, bf16, double-buffered
                            + 2 * (4 * C)         # out block, f32, double-buffered
                            + 4 * (H_FC + HL0 + C)    # f32 intermediates
                            + 2 * (HL0 + C))      # bf16 recasts of intermediates
                + 2 * weight_bytes)
    compiler_kwargs = dict(dimension_semantics=("parallel",))
    if vmem_est > 12 * (1 << 20):
        compiler_kwargs["vmem_limit_bytes"] = int(min(2 * vmem_est, 60 * (1 << 20)))

    out_t = pl.pallas_call(
        lid_kernel,
        out_shape=jax.ShapeDtypeStruct((C, M_pad), jnp.float32),
        grid_spec=pltpu.PrefetchScalarGridSpec(
            num_scalar_prefetch=0,
            grid=(n_tiles,),
            in_specs=[
                pl.BlockSpec((D_in, row_tile), lambda i: (0, i)),   # lane-dense x
                const_spec((H_FC, D_in)), const_spec((H_FC, 1)),
                const_spec((HL0, H_FC)), const_spec((HL0, 1)),
                const_spec((C, HL0)), const_spec((C, 1)),
            ],
            out_specs=pl.BlockSpec((C, row_tile), lambda i: (0, i)),
        ),
        compiler_params=pltpu.CompilerParams(**compiler_kwargs),
        cost_estimate=cost,
    )(xt,
      to_bf16(wf), to_col(bf),
      to_bf16(wi), to_col(bi),
      to_bf16(w_fused), to_col(b_fused))

    # Layout plumbing back to (T, B, C) outside the kernel.
    out2d = out_t[:, :M].T
    return out2d.reshape(T, B, C)


def init_params(key, d_in, h_fc, hl0, hl1, c):
    """Deterministic synthetic parameters in PyTorch layout: W (out, in), b (out,)."""
    ks = jax.random.split(key, 8)

    def lin(kw, kb, fan_in, fan_out):
        lim = 1.0 / math.sqrt(fan_in)
        w = jax.random.uniform(kw, (fan_out, fan_in), jnp.float32, -lim, lim)
        b = jax.random.uniform(kb, (fan_out,), jnp.float32, -lim, lim)
        return w, b

    return (
        lin(ks[0], ks[1], d_in, h_fc),   # LID_Frame.fc
        lin(ks[2], ks[3], h_fc, hl0),    # LID_Utt.fc_input
        lin(ks[4], ks[5], hl0, hl1),     # LID_Utt.fc_list[0]
        lin(ks[6], ks[7], hl1, c),       # LID_Utt.fc_output
    )


def lid_reference(x, params):
    """Pure-JAX reference mirroring the kernel's arithmetic path:
    fused last two linears, bf16 matmul operands, f32 accumulation and
    f32 bias / relu / log-softmax epilogue."""
    (wf, bf), (wi, bi), (w1, b1), (wo, bo) = params
    r = lambda a: a.astype(jnp.bfloat16).astype(jnp.float32)
    T, B, D_in = x.shape

    w_fused = wo @ w1
    b_fused = wo @ b1 + bo

    h = r(x.reshape(T * B, D_in))
    h = jax.nn.relu(h @ r(wf).T + bf)
    h = jax.nn.relu(r(h) @ r(wi).T + bi)
    logits = r(h) @ r(w_fused).T + b_fused
    out = jax.nn.log_softmax(logits, axis=-1)
    return out.reshape(T, B, -1)


if __name__ == "__main__":
    # Small shapes consistent with the module:
    #   seq T=8, batch B=2, input_size=32, hidden_size_FC=32,
    #   hidden_size_list=[32, 32], output_size=8.
    T, B, D_IN = 8, 2, 32
    H_FC, HL0, HL1, C = 32, 32, 32, 8

    key = jax.random.PRNGKey(0)
    kx, kp = jax.random.split(key)
    x = jax.random.normal(kx, (T, B, D_IN), jnp.float32)
    params = init_params(kp, D_IN, H_FC, HL0, HL1, C)

    out = jax.block_until_ready(lid_forward(x, params))
    ref = jax.block_until_ready(lid_reference(x, params))

    assert out.shape == (T, B, C), out.shape
    assert bool(jnp.allclose(out, ref, atol=2e-3, rtol=2e-3)), "mismatch vs reference"
    print("KERNEL_OK")
</pallas_src>

<mosaic_0001>
module attributes {stable_mosaic.version = 11 : i64} {
  func.func @lid_kernel(%arg0: i32, %arg1: memref<32x128xbf16, #tpu.memory_space<vmem>>, %arg2: memref<32x32xbf16, #tpu.memory_space<vmem>>, %arg3: memref<32x1xf32, #tpu.memory_space<vmem>>, %arg4: memref<32x32xbf16, #tpu.memory_space<vmem>>, %arg5: memref<32x1xf32, #tpu.memory_space<vmem>>, %arg6: memref<8x32xbf16, #tpu.memory_space<vmem>>, %arg7: memref<8x1xf32, #tpu.memory_space<vmem>>, %arg8: memref<8x128xf32, #tpu.memory_space<vmem>>) attributes {dimension_semantics = [#tpu.dimension_semantics<parallel>], iteration_bounds = array<i64: 1>, scalar_prefetch = 0 : i64, scratch_operands = 0 : i64, tpu.core_type = #tpu.core_type<tc>, window_params = [{transform_indices = @transform_0, window_bounds = array<i64: 32, 128>}, {pipeline_mode = #tpu.pipeline_mode<synchronous>, transform_indices = @transform_1, window_bounds = array<i64: 32, 32>}, {pipeline_mode = #tpu.pipeline_mode<synchronous>, transform_indices = @transform_2, window_bounds = array<i64: 32, 1>}, {pipeline_mode = #tpu.pipeline_mode<synchronous>, transform_indices = @transform_3, window_bounds = array<i64: 32, 32>}, {pipeline_mode = #tpu.pipeline_mode<synchronous>, transform_indices = @transform_4, window_bounds = array<i64: 32, 1>}, {pipeline_mode = #tpu.pipeline_mode<synchronous>, transform_indices = @transform_5, window_bounds = array<i64: 8, 32>}, {pipeline_mode = #tpu.pipeline_mode<synchronous>, transform_indices = @transform_6, window_bounds = array<i64: 8, 1>}, {transform_indices = @transform_7, window_bounds = array<i64: 8, 128>}]} {
    %c0 = arith.constant 0 : index
    %c0_0 = arith.constant 0 : index
    %0 = vector.load %arg2[%c0, %c0_0] : memref<32x32xbf16, #tpu.memory_space<vmem>>, vector<32x32xbf16>
    %c0_1 = arith.constant 0 : index
    %c0_2 = arith.constant 0 : index
    %1 = vector.load %arg1[%c0_1, %c0_2] : memref<32x128xbf16, #tpu.memory_space<vmem>>, vector<32x128xbf16>
    %cst = arith.constant dense<0.000000e+00> : vector<32x128xf32>
    %2 = tpu.matmul %0, %1, %cst {dimension_numbers = #tpu.dot_dimension_numbers<[1], [0], [0], [1], [0, 0, 1, 1], [], []>} : vector<32x32xbf16>, vector<32x128xbf16>, vector<32x128xf32> -> vector<32x128xf32>
    %c0_3 = arith.constant 0 : index
    %c0_4 = arith.constant 0 : index
    %3 = vector.load %arg3[%c0_3, %c0_4] : memref<32x1xf32, #tpu.memory_space<vmem>>, vector<32x1xf32>
    %4 = vector.broadcast %3 : vector<32x1xf32> to vector<32x128xf32>
    %5 = arith.addf %2, %4 : vector<32x128xf32>
    %cst_5 = arith.constant 0.000000e+00 : f32
    %6 = vector.broadcast %cst_5 : f32 to vector<32x128xf32>
    %7 = arith.maximumf %5, %6 : vector<32x128xf32>
    %c0_6 = arith.constant 0 : index
    %c0_7 = arith.constant 0 : index
    %8 = vector.load %arg4[%c0_6, %c0_7] : memref<32x32xbf16, #tpu.memory_space<vmem>>, vector<32x32xbf16>
    %9 = arith.truncf %7 : vector<32x128xf32> to vector<32x128xbf16>
    %cst_8 = arith.constant dense<0.000000e+00> : vector<32x128xf32>
    %10 = tpu.matmul %8, %9, %cst_8 {dimension_numbers = #tpu.dot_dimension_numbers<[1], [0], [0], [1], [0, 0, 1, 1], [], []>} : vector<32x32xbf16>, vector<32x128xbf16>, vector<32x128xf32> -> vector<32x128xf32>
    %c0_9 = arith.constant 0 : index
    %c0_10 = arith.constant 0 : index
    %11 = vector.load %arg5[%c0_9, %c0_10] : memref<32x1xf32, #tpu.memory_space<vmem>>, vector<32x1xf32>
    %12 = vector.broadcast %11 : vector<32x1xf32> to vector<32x128xf32>
    %13 = arith.addf %10, %12 : vector<32x128xf32>
    %cst_11 = arith.constant 0.000000e+00 : f32
    %14 = vector.broadcast %cst_11 : f32 to vector<32x128xf32>
    %15 = arith.maximumf %13, %14 : vector<32x128xf32>
    %c0_12 = arith.constant 0 : index
    %c0_13 = arith.constant 0 : index
    %16 = vector.load %arg6[%c0_12, %c0_13] : memref<8x32xbf16, #tpu.memory_space<vmem>>, vector<8x32xbf16>
    %17 = arith.truncf %15 : vector<32x128xf32> to vector<32x128xbf16>
    %cst_14 = arith.constant dense<0.000000e+00> : vector<8x128xf32>
    %18 = tpu.matmul %16, %17, %cst_14 {dimension_numbers = #tpu.dot_dimension_numbers<[1], [0], [0], [1], [0, 0, 1, 1], [], []>} : vector<8x32xbf16>, vector<32x128xbf16>, vector<8x128xf32> -> vector<8x128xf32>
    %c0_15 = arith.constant 0 : index
    %c0_16 = arith.constant 0 : index
    %19 = vector.load %arg7[%c0_15, %c0_16] : memref<8x1xf32, #tpu.memory_space<vmem>>, vector<8x1xf32>
    %20 = vector.broadcast %19 : vector<8x1xf32> to vector<8x128xf32>
    %21 = arith.addf %18, %20 : vector<8x128xf32>
    %cst_17 = arith.constant dense<0xFF800000> : vector<128xf32>
    %22 = vector.multi_reduction <maximumf>, %21, %cst_17 [0] : vector<8x128xf32> to vector<128xf32>
    %23 = vector.shape_cast %22 : vector<128xf32> to vector<1x128xf32>
    %24 = vector.broadcast %23 : vector<1x128xf32> to vector<8x128xf32>
    %25 = arith.subf %21, %24 : vector<8x128xf32>
    %26 = math.exp %25 : vector<8x128xf32>
    %cst_18 = arith.constant dense<0.000000e+00> : vector<128xf32>
    %27 = vector.multi_reduction <add>, %26, %cst_18 [0] : vector<8x128xf32> to vector<128xf32>
    %28 = vector.shape_cast %27 : vector<128xf32> to vector<1x128xf32>
    %29 = math.log %28 : vector<1x128xf32>
    %30 = vector.broadcast %29 : vector<1x128xf32> to vector<8x128xf32>
    %31 = arith.subf %25, %30 : vector<8x128xf32>
    %c0_19 = arith.constant 0 : index
    %c0_20 = arith.constant 0 : index
    %32 = vector.load %arg8[%c0_19, %c0_20] : memref<8x128xf32, #tpu.memory_space<vmem>>, vector<8x128xf32>
    tpu.vector_store %arg8[%c0_19, %c0_20], %31 {strides = array<i32>} : memref<8x128xf32, #tpu.memory_space<vmem>>, vector<8x128xf32>,
    return
  }
  func.func @transform_0(%arg0: i32) -> (i32, i32) {
    %c0_i32 = arith.constant 0 : i32
    %c0_i32_0 = arith.constant 0 : i32
    return %c0_i32, %arg0 : i32, i32
  }
  func.func @transform_1(%arg0: i32) -> (i32, i32) {
    %c0_i32 = arith.constant 0 : i32
    %c0_i32_0 = arith.constant 0 : i32
    %c0_i32_1 = arith.constant 0 : i32
    return %c0_i32, %c0_i32_0 : i32, i32
  }
  func.func @transform_2(%arg0: i32) -> (i32, i32) {
    %c0_i32 = arith.constant 0 : i32
    %c0_i32_0 = arith.constant 0 : i32
    %c0_i32_1 = arith.constant 0 : i32
    return %c0_i32, %c0_i32_0 : i32, i32
  }
  func.func @transform_3(%arg0: i32) -> (i32, i32) {
    %c0_i32 = arith.constant 0 : i32
    %c0_i32_0 = arith.constant 0 : i32
    %c0_i32_1 = arith.constant 0 : i32
    return %c0_i32, %c0_i32_0 : i32, i32
  }
  func.func @transform_4(%arg0: i32) -> (i32, i32) {
    %c0_i32 = arith.constant 0 : i32
    %c0_i32_0 = arith.constant 0 : i32
    %c0_i32_1 = arith.constant 0 : i32
    return %c0_i32, %c0_i32_0 : i32, i32
  }
  func.func @transform_5(%arg0: i32) -> (i32, i32) {
    %c0_i32 = arith.constant 0 : i32
    %c0_i32_0 = arith.constant 0 : i32
    %c0_i32_1 = arith.constant 0 : i32
    return %c0_i32, %c0_i32_0 : i32, i32
  }
  func.func @transform_6(%arg0: i32) -> (i32, i32) {
    %c0_i32 = arith.constant 0 : i32
    %c0_i32_0 = arith.constant 0 : i32
    %c0_i32_1 = arith.constant 0 : i32
    return %c0_i32, %c0_i32_0 : i32, i32
  }
  func.func @transform_7(%arg0: i32) -> (i32, i32) {
    %c0_i32 = arith.constant 0 : i32
    %c0_i32_0 = arith.constant 0 : i32
    return %c0_i32, %arg0 : i32, i32
  }
}

</mosaic_0001>

<bundles_post_ra>
// kernel: tpu_custom_call.1
= control target key start
LH: loop header
LB: loop body
LE: loop exit
PB: predicated region body
PF: predicated region fallthrough
CT: control target
= control target key end

     0   :  { %vm82_vm0 = vcmask 261120   ;;  %v412_v3 = vmov 0   ;;  %s521_s0 = inlined_call_operand.vmem [shape: bf16[32,128], index: 0, kind: input, shape index: {}]   ;;  %s522_s1 = inlined_call_operand.vmem [shape: bf16[32,32], index: 1, kind: input, shape index: {}]   ;;  %s523_s2 = inlined_call_operand.vmem [shape: f32[32,1], index: 2, kind: input, shape index: {}]   ;;  %s524_s3 = inlined_call_operand.vmem [shape: bf16[32,32], index: 3, kind: input, shape index: {}]   ;;  %s525_s4 = inlined_call_operand.vmem [shape: f32[32,1], index: 4, kind: input, shape index: {}]   ;;  %s526_s5 = inlined_call_operand.vmem [shape: bf16[8,32], index: 5, kind: input, shape index: {}]   ;;  %s527_s6 = inlined_call_operand.vmem [shape: f32[8,1], index: 6, kind: input, shape index: {}]   ;;  %s528_s7 = inlined_call_operand.hbm [shape: f32[8,128], index: 7, kind: output, shape index: {}]  }
   0x1   :  { %v378_v0 = vld [vmem:[%s521_s0] sm:$0xff]   ;;  %v379_v1 = vld [vmem:[%s521_s0 + $0x8] sm:$0xff]   ;;  %376 = vset.pattern.permute.xlu0 %v412_v3  ;;  %377 = vset.pattern.permute.xlu1 %v412_v3  ;;  %v38_v5 = vld [vmem:[%s523_s2 + $0x10] sm:$0xff] }
   0x2   :  { %348 = vmatprep.subr.bf16.mxu0 %v378_v0  ;;  %v380_v2 = vld [vmem:[%s522_s1] sm:$0xff]   ;;  %52 = vperm.xlu1 %377, %v38_v5   ;;  %v381_v6 = vld [vmem:[%s522_s1 + $0x8] sm:$0xff]   ;;  %v39_v8 = vld [vmem:[%s523_s2 + $0x18] sm:$0xff] }
   0x3   :  { %349 = vmatpush3.bf16.msra.mxu0 %v378_v0  ;;  %352 = vmatprep.mubr.msk.bf16.mxu0 %vm82_vm0, %v380_v2  ;;  %v36_v4 = vld [vmem:[%s523_s2] sm:$0xff]  ;;  %v37_v7 = vld [vmem:[%s523_s2 + $0x8] sm:$0xff] }
   0x4   :  { %350 = vmatprep.subr.bf16.mxu0 %v379_v1  ;;  %42 = vperm.xlu0 %376, %v36_v4  }
   0x7   :  { %351 = vmatpush3.bf16.msra.mxu0 %v379_v1 }
   0x8   :  { %12 = vsyncpa [#allocation3], 0  ;;  %47 = vperm.xlu0 %376, %v37_v7   ;;  %57 = vperm.xlu1 %377, %v39_v8   ;;  %v148_v9 = vld [vmem:[%s525_s4] sm:$0xff]  ;;  %v149_v10 = vld [vmem:[%s525_s4 + $0x8] sm:$0xff]  ;;  %v413_v34 = vmov 0.0   ;;  %vm414_vm1 = vmmov 0  }
   0x9   :  { %v150_v11 = vld [vmem:[%s525_s4 + $0x10] sm:$0xff]  ;;  %v151_v12 = vld [vmem:[%s525_s4 + $0x18] sm:$0xff]  ;;  %v244_v13 = vld [vmem:[%s527_s6] sm:$0xff]  ;;  %364 = vmatprep.subr.bf16.mxu0 %v413_v34 }
   0xa   :  { %353 = vmatmul.mubr.msk.bf16.vlgmr.msra.gmra.mrb[0].mxu0 %vm82_vm0, %v381_v6  ;;  %v382_v14 = vld [vmem:[%s524_s3] sm:$0xff]   ;;  %v383_v33 = vld [vmem:[%s524_s3 + $0x8] sm:$0xff]  }
   0xb   :  { %360 = vmatprep.mubr.msk.bf16.mxu1 %vm82_vm0, %v382_v14  ;;  %368 = vmatprep.mubr.msk.bf16.mxu0 %vm414_vm1, %v413_v34  ;;  %v241_v53 = vld [vmem:[%s526_s5] sm:$0xf]  ;;  %s415_s5 = smov [#allocation2]  }
   0xc   :  { %154 = vperm.xlu0 %376, %v148_v9   ;;  %159 = vperm.xlu1 %377, %v149_v10   ;;  %s318_s27 = sshll.u32 %s415_s5, 4  ;;  %s319_s27 = int_to_ptr.vmem [resolvable:$true] %s318_s27 }
   0xd   :  { %s388_s28 = scalar_lea.vmem %s319_s27, 128  ;;  %p393_p1 = scmp.lt.s32.totalorder %s319_s27, %s319_s27 }
   0xe   :  { %p389_p0 = scmp.ne.s32.totalorder %s319_s27, %s388_s28  ;;  %p394_p2 = scmp.lt.s32.totalorder %s388_s28, %s388_s28 }
  0x10   :  { %164 = vperm.xlu0 %376, %v150_v11   ;;  %169 = vperm.xlu1 %377, %v151_v12   ;;  %p395_p3 = por %p394_p2, %p393_p1 }
  0x12   :  { %p396_p4 = pnand %p395_p3, %p389_p0 }
  0x14   :  { %247 = vperm.xlu0 %376, %v244_v13  }
  0x81   :  { %v53_v15 = vpop.permute.xlu1 %52 }
  0x83   :  { %v43_v16 = vpop.permute.xlu0 %42 }
  0x87   :  { %v58_v20 = vpop.permute.xlu1 %57  ;;  %v48_v23 = vpop.permute.xlu0 %47 }
  0x8b   :  { %v155_v35 = vpop.permute.xlu0 %154  ;;  %v160_v36 = vpop.permute.xlu1 %159 }
  0x8f   :  { %v165_v37 = vpop.permute.xlu0 %164  ;;  %v170_v41 = vpop.permute.xlu1 %169 }
  0x93   :  { %v248_v54 = vpop.permute.xlu0 %247 }
  0xdd   :  { %v354_v17 = vpop.f32.mrb[0].mxu0 }
  0xde   :  { %v132_v18 = vadd.f32 %v354_v17, %v53_v15  ;;  %v123_v19 = vpop.f32.mrb[1].mxu0 }
  0xdf   :  { %v124_v21 = vadd.f32 %v123_v19, %v43_v16  ;;  %v355_v22 = vpop.f32.mrb[2].mxu0 }
  0xe0   :  { %v135_v24 = vadd.f32 %v355_v22, %v58_v20  ;;  %v126_v25 = vpop.f32.mrb[3].mxu0  ;;  %v140_v27 = vmax.f32 %v132_v18, 0.0 }
  0xe1   :  { %v127_v26 = vadd.f32 %v126_v25, %v48_v23  ;;  %v138_v29 = vmax.f32 %v124_v21, 0.0 }
  0xe2   :  { %v141_v28 = vmax.f32 %v135_v24, 0.0 }
  0xe3   :  { %v139_v30 = vmax.f32 %v127_v26, 0.0 }
  0xe4   :  { %v147_v31 = vpack.c.bf16 %v141_v28, %v140_v27 }
  0xe5   :  { %v146_v32 = vpack.c.bf16 %v139_v30, %v138_v29 }
  0xe7   :  { %356 = vmatprep.subr.bf16.mxu1 %v146_v32 }
  0xe8   :  { %357 = vmatpush3.bf16.msra.mxu1 %v146_v32 }
  0xe9   :  { %358 = vmatprep.subr.bf16.mxu1 %v147_v31 }
  0xec   :  { %359 = vmatpush3.bf16.msra.mxu1 %v147_v31 }
  0xef   :  { %361 = vmatmul.mubr.msk.bf16.vlgmr.msra.gmra.mrb[0].mxu1 %vm82_vm0, %v383_v33 }
 0x1c2   :  { %v362_v38 = vpop.f32.mrb[0].mxu1 }
 0x1c3   :  { %v231_v39 = vadd.f32 %v362_v38, %v165_v37  ;;  %v222_v40 = vpop.f32.mrb[1].mxu1 }
 0x1c4   :  { %v223_v42 = vadd.f32 %v222_v40, %v155_v35  ;;  %v363_v43 = vpop.f32.mrb[2].mxu1 }
 0x1c5   :  { %v234_v44 = vadd.f32 %v363_v43, %v170_v41  ;;  %v225_v45 = vpop.f32.mrb[3].mxu1  ;;  %v239_v47 = vmax.f32 %v231_v39, 0.0 }
 0x1c6   :  { %v226_v46 = vadd.f32 %v225_v45, %v160_v36  ;;  %v237_v49 = vmax.f32 %v223_v42, 0.0 }
 0x1c7   :  { %v240_v48 = vmax.f32 %v234_v44, 0.0 }
 0x1c8   :  { %v238_v50 = vmax.f32 %v226_v46, 0.0 }
 0x1c9   :  { %v243_v51 = vpack.c.bf16 %v240_v48, %v239_v47 }
 0x1ca   :  { %v242_v52 = vpack.c.bf16 %v238_v50, %v237_v49 }
 0x1cc   :  { %365 = vmatpush3.bf16.msra.mxu0 %v242_v52 }
 0x1cd   :  { %366 = vmatprep.subr.bf16.mxu0 %v413_v34 }
 0x1d0   :  { %367 = vmatpush3.bf16.msra.mxu0 %v243_v51 }
 0x1d3   :  { %369 = vmatmul.mubr.msk.bf16.vlgmr.msra.gmra.mrb[4].mxu0 %vm82_vm0, %v241_v53 }
 0x2a6   :  { %v287_v55 = vpop.f32.mrb[4].mxu0 }
 0x2a7   :  { %v288_v56 = vadd.f32 %v287_v55, %v248_v54  ;;  %v370_v57 = vpop.f32.mrb[5].mxu0 }
 0x2a8   :  { %v290_v58 = vpop.f32.mrb[6].mxu0 }
 0x2a9   :  { %v293_v59 = vrot.slane %v288_v56, 4  ;;  %v371_v60 = vpop.f32.mrb[7].mxu0 }
 0x2ab   :  { %v294_v61 = vmax.f32 %v288_v56, %v293_v59 }
 0x2ad   :  { %v295_v62 = vrot.slane %v294_v61, 2 }
 0x2af   :  { %v296_v63 = vmax.f32 %v294_v61, %v295_v62 }
 0x2b1   :  { %v297_v0 = vrot.slane %v296_v63, 1 }
 0x2b3   :  { %v298_v1 = vmax.f32 %v296_v63, %v297_v0 }
 0x2b5   :  { %v299_v2 = vsub.f32 %v288_v56, %v298_v1 }
 0x2b7   :  { %v300_v3 = vmul.f32 1.442695, %v299_v2 }
 0x2b9   :  { %384 = vpow2.f32 %v300_v3 }
 0x2c3   :  { %v385_v4 = vpop.eup %384 }
 0x2c4   :  { %v302_v5 = vrot.slane %v385_v4, 4 }
 0x2c6   :  { %v303_v6 = vadd.f32 %v385_v4, %v302_v5 }
 0x2c8   :  { %v304_v7 = vrot.slane %v303_v6, 2 }
 0x2ca   :  { %v305_v8 = vadd.f32 %v304_v7, %v303_v6 }
 0x2cc   :  { %v306_v9 = vrot.slane %v305_v8, 1 }
 0x2ce   :  { %v307_v10 = vadd.f32 %v306_v9, %v305_v8 }
 0x2d0   :  { %386 = vlog2.f32 %v307_v10 }
 0x2da   :  { %v387_v11 = vpop.eup %386 }
 0x2db   :  { %v309_v12 = vmul.f32 0.6931472, %v387_v11 }
 0x2dd   :  { %v310_v13 = vsub.f32 %v299_v2, %v309_v12 }
 0x2df   :  { %311 = vst [vmem:[#allocation2] sm:$0xff] %v310_v13 }
 0x2e0   :  { %399 = shalt.err (!%p396_p4)
}
 0x2e1   :  { %s400_s8 = scalar_lea.hbm %s528_s7, 128 }
 0x2e2   :  { %p401_p5 = scmp.ne.s32.totalorder %s528_s7, %s400_s8  ;;  %p404_p6 = scmp.lt.u32.totalorder %s400_s8, %s528_s7 }
 0x2e4   :  { %p406_p7 = pnand %p404_p6, %p401_p5 }
 0x2e6   :  { %409 = shalt.err (!%p406_p7)
}
 0x2e7   :  { %321 = dma.vmem_to_hbm [thread:$0]  %s319_s27, 128, %s528_s7, [#allocation3]  }
 0x2e8   :  { %410 = dma.done.wait [#allocation3], 128  }
 0x2e9   :  { %411 = vsyncadd [#allocation3], 4294967168 }
 0x2ea   :  { %325 = vsyncpa [#allocation3], 1 }

</bundles_post_ra>
